<compile_context>
chip_gen: v6e
topology: v6e:2x2x1
jax: 0.10.0
libtpu: 0.0.40
codegen_flags: <defaults>
</compile_context>

<pallas_src>
import functools

import jax
import jax.numpy as jnp
from jax.experimental import pallas as pl
from jax.experimental.pallas import tpu as pltpu


def _layernorm_kernel(x_ref, a_ref, b_ref, o_ref, *, eps):
    # x_ref: (tile_m, D), a_ref/b_ref: (1, D), o_ref: (tile_m, D)
    x = x_ref[...].astype(jnp.float32)
    d = x.shape[-1]
    mean = jnp.sum(x, axis=-1, keepdims=True) * (1.0 / d)
    xc = x - mean
    # unbiased variance (divide by D-1) to match torch.std's default
    var = jnp.sum(xc * xc, axis=-1, keepdims=True) * (1.0 / (d - 1))
    inv = 1.0 / (jnp.sqrt(var) + eps)          # eps added to std, as in the reference
    out = a_ref[...] * (xc * inv) + b_ref[...]
    o_ref[...] = out.astype(o_ref.dtype)


def layer_norm_pallas(x2d, a_2, b_2, *, eps=1e-6, tile_m=256):
    """x2d: (M, D); a_2, b_2: (D,). Row-tiled LayerNorm over the last axis."""
    M, D = x2d.shape
    tile_m = min(tile_m, M)
    if tile_m < M and tile_m % 8 != 0:
        tile_m = max(8, (tile_m // 8) * 8)     # keep sublane tiling (8,·) friendly

    a2d = a_2.reshape(1, D).astype(jnp.float32)
    b2d = b_2.reshape(1, D).astype(jnp.float32)

    grid = (pl.cdiv(M, tile_m),)
    return pl.pallas_call(
        functools.partial(_layernorm_kernel, eps=eps),
        out_shape=jax.ShapeDtypeStruct((M, D), x2d.dtype),
        grid_spec=pltpu.PrefetchScalarGridSpec(
            num_scalar_prefetch=0,
            grid=grid,
            in_specs=[
                pl.BlockSpec((tile_m, D), lambda i: (i, 0)),   # x row tile
                pl.BlockSpec((1, D), lambda i: (0, 0)),        # gamma (constant)
                pl.BlockSpec((1, D), lambda i: (0, 0)),        # beta  (constant)
            ],
            out_specs=pl.BlockSpec((tile_m, D), lambda i: (i, 0)),
        ),
        compiler_params=pltpu.CompilerParams(
            dimension_semantics=("parallel",)),
    )(x2d, a2d, b2d)


def encoder_forward(x, mask, params, *, tile_m=256):
    """x: (B, S, D). Mirrors Encoder.forward: layers(...) then final LayerNorm."""
    # TODO(synk): the generic per-layer submodule (`layer` / EncoderLayer) is not part of
    # the provided spec (only LayerNorm + clones are given), so the layer stack is not
    # lowered here; only the Encoder's final LayerNorm runs as a Pallas kernel.
    del mask  # mask is consumed only by the (unspecified) per-layer modules
    B, S, D = x.shape
    out2d = layer_norm_pallas(
        x.reshape(B * S, D), params["a_2"], params["b_2"],
        eps=params["eps"], tile_m=tile_m)
    return out2d.reshape(B, S, D)


def init_params(key, d_model):
    k1, k2 = jax.random.split(key)
    return {
        # LayerNorm params (reference init: ones / zeros; randomized here to exercise both)
        "a_2": 1.0 + 0.1 * jax.random.normal(k1, (d_model,), jnp.float32),
        "b_2": 0.1 * jax.random.normal(k2, (d_model,), jnp.float32),
        "eps": 1e-6,
    }


if __name__ == "__main__":
    key = jax.random.PRNGKey(0)
    kx, kp = jax.random.split(key)

    # small shapes consistent with the module: (batch, seq, d_model)
    B, S, d_model = 2, 8, 32

    params = init_params(kp, d_model)
    x = jax.random.normal(kx, (B, S, d_model), jnp.float32)
    mask = jnp.ones((B, 1, S), jnp.float32)   # passed through, unused (see TODO above)

    out = encoder_forward(x, mask, params)
    out = jax.block_until_ready(out)

    # plain-JAX reference with the exact PyTorch LayerNorm semantics
    mean = jnp.mean(x, axis=-1, keepdims=True)
    xc = x - mean
    std = jnp.sqrt(jnp.sum(xc * xc, axis=-1, keepdims=True) / (d_model - 1))
    ref = params["a_2"] * xc / (std + params["eps"]) + params["b_2"]

    assert out.shape == (B, S, d_model)
    assert jnp.allclose(out, ref, atol=1e-5, rtol=1e-5)

    print("KERNEL_OK")
</pallas_src>

<mosaic_0001>
module attributes {stable_mosaic.version = 11 : i64} {
  func.func @_layernorm_kernel(%arg0: i32, %arg1: memref<16x32xf32, #tpu.memory_space<vmem>>, %arg2: memref<1x32xf32, #tpu.memory_space<vmem>>, %arg3: memref<1x32xf32, #tpu.memory_space<vmem>>, %arg4: memref<16x32xf32, #tpu.memory_space<vmem>>) attributes {dimension_semantics = [#tpu.dimension_semantics<parallel>], iteration_bounds = array<i64: 1>, scalar_prefetch = 0 : i64, scratch_operands = 0 : i64, tpu.core_type = #tpu.core_type<tc>, window_params = [{transform_indices = @transform_0, window_bounds = array<i64: 16, 32>}, {pipeline_mode = #tpu.pipeline_mode<synchronous>, transform_indices = @transform_1, window_bounds = array<i64: 1, 32>}, {pipeline_mode = #tpu.pipeline_mode<synchronous>, transform_indices = @transform_2, window_bounds = array<i64: 1, 32>}, {transform_indices = @transform_3, window_bounds = array<i64: 16, 32>}]} {
    %c0 = arith.constant 0 : index
    %c0_0 = arith.constant 0 : index
    %0 = vector.load %arg1[%c0, %c0_0] : memref<16x32xf32, #tpu.memory_space<vmem>>, vector<16x32xf32>
    %cst = arith.constant dense<0.000000e+00> : vector<16xf32>
    %1 = vector.multi_reduction <add>, %0, %cst [1] : vector<16x32xf32> to vector<16xf32>
    %2 = vector.shape_cast %1 : vector<16xf32> to vector<16x1xf32>
    %cst_1 = arith.constant 3.125000e-02 : f32
    %3 = vector.broadcast %cst_1 : f32 to vector<16x1xf32>
    %4 = arith.mulf %2, %3 : vector<16x1xf32>
    %5 = vector.broadcast %4 : vector<16x1xf32> to vector<16x32xf32>
    %6 = arith.subf %0, %5 : vector<16x32xf32>
    %7 = arith.mulf %6, %6 : vector<16x32xf32>
    %cst_2 = arith.constant dense<0.000000e+00> : vector<16xf32>
    %8 = vector.multi_reduction <add>, %7, %cst_2 [1] : vector<16x32xf32> to vector<16xf32>
    %9 = vector.shape_cast %8 : vector<16xf32> to vector<16x1xf32>
    %cst_3 = arith.constant 0.0322580636 : f32
    %10 = vector.broadcast %cst_3 : f32 to vector<16x1xf32>
    %11 = arith.mulf %9, %10 : vector<16x1xf32>
    %12 = math.sqrt %11 : vector<16x1xf32>
    %cst_4 = arith.constant 9.99999997E-7 : f32
    %13 = vector.broadcast %cst_4 : f32 to vector<16x1xf32>
    %14 = arith.addf %12, %13 : vector<16x1xf32>
    %cst_5 = arith.constant 1.000000e+00 : f32
    %15 = vector.broadcast %cst_5 : f32 to vector<16x1xf32>
    %16 = arith.divf %15, %14 : vector<16x1xf32>
    %c0_6 = arith.constant 0 : index
    %c0_7 = arith.constant 0 : index
    %17 = vector.load %arg2[%c0_6, %c0_7] : memref<1x32xf32, #tpu.memory_space<vmem>>, vector<1x32xf32>
    %18 = vector.broadcast %16 : vector<16x1xf32> to vector<16x32xf32>
    %19 = arith.mulf %6, %18 : vector<16x32xf32>
    %20 = vector.broadcast %17 : vector<1x32xf32> to vector<16x32xf32>
    %21 = arith.mulf %20, %19 : vector<16x32xf32>
    %c0_8 = arith.constant 0 : index
    %c0_9 = arith.constant 0 : index
    %22 = vector.load %arg3[%c0_8, %c0_9] : memref<1x32xf32, #tpu.memory_space<vmem>>, vector<1x32xf32>
    %23 = vector.broadcast %22 : vector<1x32xf32> to vector<16x32xf32>
    %24 = arith.addf %21, %23 : vector<16x32xf32>
    %c0_10 = arith.constant 0 : index
    %c0_11 = arith.constant 0 : index
    %25 = vector.load %arg4[%c0_10, %c0_11] : memref<16x32xf32, #tpu.memory_space<vmem>>, vector<16x32xf32>
    tpu.vector_store %arg4[%c0_10, %c0_11], %24 {strides = array<i32>} : memref<16x32xf32, #tpu.memory_space<vmem>>, vector<16x32xf32>,
    return
  }
  func.func @transform_0(%arg0: i32) -> (i32, i32) {
    %c0_i32 = arith.constant 0 : i32
    %c0_i32_0 = arith.constant 0 : i32
    return %arg0, %c0_i32 : i32, i32
  }
  func.func @transform_1(%arg0: i32) -> (i32, i32) {
    %c0_i32 = arith.constant 0 : i32
    %c0_i32_0 = arith.constant 0 : i32
    %c0_i32_1 = arith.constant 0 : i32
    return %c0_i32, %c0_i32_0 : i32, i32
  }
  func.func @transform_2(%arg0: i32) -> (i32, i32) {
    %c0_i32 = arith.constant 0 : i32
    %c0_i32_0 = arith.constant 0 : i32
    %c0_i32_1 = arith.constant 0 : i32
    return %c0_i32, %c0_i32_0 : i32, i32
  }
  func.func @transform_3(%arg0: i32) -> (i32, i32) {
    %c0_i32 = arith.constant 0 : i32
    %c0_i32_0 = arith.constant 0 : i32
    return %arg0, %c0_i32 : i32, i32
  }
}

</mosaic_0001>

<bundles_post_ra>
// kernel: tpu_custom_call.1
= control target key start
LH: loop header
LB: loop body
LE: loop exit
PB: predicated region body
PF: predicated region fallthrough
CT: control target
= control target key end

     0   :  { %8 = vsyncpa [#allocation3], 0  ;;  %s217_s0 = inlined_call_operand.hbm [shape: f32[16,32], index: 0, kind: input, shape index: {}]   ;;  %s218_s1 = inlined_call_operand.vmem [shape: f32[1,32], index: 1, kind: input, shape index: {}]   ;;  %s219_s2 = inlined_call_operand.vmem [shape: f32[1,32], index: 2, kind: input, shape index: {}]   ;;  %s220_s3 = inlined_call_operand.hbm [shape: f32[16,32], index: 3, kind: output, shape index: {}]  }
   0x1   :  { %9 = vsyncpa [#allocation4], 0  ;;  %s169_s12 = smov [#allocation2]  }
   0x2   :  { %s15_s13 = sshll.u32 %s169_s12, 4  ;;  %s16_s13 = int_to_ptr.vmem [resolvable:$true] %s15_s13 }
   0x3   :  { %s133_s14 = scalar_lea.vmem %s16_s13, 256  ;;  %p138_p1 = scmp.lt.s32.totalorder %s16_s13, %s16_s13 }
   0x4   :  { %p134_p0 = scmp.ne.s32.totalorder %s16_s13, %s133_s14  ;;  %p139_p2 = scmp.lt.s32.totalorder %s133_s14, %s133_s14 }
   0x6   :  { %p140_p3 = por %p139_p2, %p138_p1 }
   0x8   :  { %p141_p4 = pnand %p140_p3, %p134_p0 }
   0xa   :  { %144 = shalt.err (!%p141_p4)
}
   0xb   :  { %s170_s15 = smov 128   ;;  %s171_s16 = smov 8  }
   0xc   :  { %21 = dma.hbm_to_vmem [thread:$0]  %s217_s0, 256, %s16_s13, [#allocation3], %s170_s15, %s170_s15, %s171_s16  }
   0xd   :  { %165 = dma.done.wait [#allocation3], 256  }
   0xe   :  { %166 = vsyncadd [#allocation3], 4294967040  ;;  %vm31_vm0 = vcmask 261120   ;;  %v29_v0 = vld [vmem:[#allocation2] sm:$0xff]  ;;  %v30_v1 = vld [vmem:[#allocation2 + $0x8] sm:$0xff]  ;;  %s172_s22 = smov [#allocation5]  }
   0xf   :  { %v32_v2 = vsel %vm31_vm0, %v29_v0, 0.0  ;;  %v35_v3 = vsel %vm31_vm0, %v30_v1, 0.0  ;;  %v111_v31 = vld [vmem:[%s218_s1] ss:$0 sm:$0xff]  ;;  %s99_s23 = sshll.u32 %s172_s22, 4  ;;  %s100_s23 = int_to_ptr.vmem [resolvable:$true] %s99_s23 }
  0x10   :  { %33 = vadd.xlane.f32.xlu0 %v32_v2  ;;  %v112_v33 = vld [vmem:[%s219_s2] ss:$0 sm:$0xff]  ;;  %s145_s24 = scalar_lea.vmem %s100_s23, 256  ;;  %p150_p6 = scmp.lt.s32.totalorder %s100_s23, %s100_s23 }
  0x11   :  { %p146_p5 = scmp.ne.s32.totalorder %s100_s23, %s145_s24  ;;  %p151_p7 = scmp.lt.s32.totalorder %s145_s24, %s145_s24 }
  0x13   :  { %p152_p8 = por %p151_p7, %p150_p6 }
  0x14   :  { %36 = vadd.xlane.f32.xlu0 %v35_v3 }
  0x15   :  { %p153_p9 = pnand %p152_p8, %p146_p5 }
  0x99   :  { %v34_v4 = vpop.xlane.xlu0 %33 }
  0x9a   :  { %v38_v5 = vmul.f32 0.03125, %v34_v4 }
  0x9c   :  { %v40_v6 = vsub.f32 %v29_v0, %v38_v5 }
  0x9d   :  { %v37_v7 = vpop.xlane.xlu0 %36 }
  0x9e   :  { %v39_v8 = vmul.f32 0.03125, %v37_v7  ;;  %v42_v9 = vmul.f32 %v40_v6, %v40_v6 }
  0xa0   :  { %v41_v10 = vsub.f32 %v30_v1, %v39_v8  ;;  %v44_v11 = vsel %vm31_vm0, %v42_v9, 0.0 }
  0xa1   :  { %45 = vadd.xlane.f32.xlu1 %v44_v11 }
  0xa2   :  { %v43_v12 = vmul.f32 %v41_v10, %v41_v10 }
  0xa4   :  { %v47_v13 = vsel %vm31_vm0, %v43_v12, 0.0 }
  0xa5   :  { %48 = vadd.xlane.f32.xlu1 %v47_v13 }
 0x12a   :  { %v46_v14 = vpop.xlane.xlu1 %45 }
 0x12b   :  { %v50_v15 = vmul.f32 0.032258064, %v46_v14 }
 0x12d   :  { %117 = vrsqrt.f32 %v50_v15  ;;  %vm54_vm1 = vcmp.eq.f32.partialorder %v50_v15, inf  ;;  %v57_v20 = vand.u32 2147483648, %v50_v15  ;;  %vm56_vm2 = vcmp.eq.f32.partialorder %v50_v15, 0.0 }
 0x12e   :  { %v49_v16 = vpop.xlane.xlu1 %48 }
 0x12f   :  { %v51_v17 = vmul.f32 0.032258064, %v49_v16 }
 0x131   :  { %119 = vrsqrt.f32 %v51_v17  ;;  %vm61_vm3 = vcmp.eq.f32.partialorder %v51_v17, inf  ;;  %v64_v26 = vand.u32 2147483648, %v51_v17  ;;  %vm63_vm4 = vcmp.eq.f32.partialorder %v51_v17, 0.0 }
 0x13a   :  { %v118_v18 = vpop.eup %117 }
 0x13b   :  { %v53_v19 = vmul.f32 %v118_v18, %v50_v15 }
 0x13d   :  { %v55_v21 = vsel %vm54_vm1, %v50_v15, %v53_v19 }
 0x13e   :  { %v120_v22 = vpop.eup %119  ;;  %v58_v23 = vsel %vm56_vm2, %v57_v20, %v55_v21 }
 0x13f   :  { %v66_v24 = vadd.f32 1e-06, %v58_v23  ;;  %v60_v25 = vmul.f32 %v120_v22, %v51_v17 }
 0x141   :  { %121 = vrcp.f32 %v66_v24  ;;  %v62_v27 = vsel %vm61_vm3, %v51_v17, %v60_v25 }
 0x142   :  { %v65_v28 = vsel %vm63_vm4, %v64_v26, %v62_v27 }
 0x143   :  { %v67_v29 = vadd.f32 1e-06, %v65_v28 }
 0x145   :  { %123 = vrcp.f32 %v67_v29 }
 0x14e   :  { %v122_v30 = vpop.eup %121 }
 0x14f   :  { %v73_v32 = vmul.f32 %v122_v30, %v40_v6 }
 0x151   :  { %v81_v34 = vmul.f32 %v111_v31, %v73_v32 }
 0x152   :  { %v124_v35 = vpop.eup %123 }
 0x153   :  { %v74_v36 = vmul.f32 %v124_v35, %v41_v10  ;;  %v90_v37 = vadd.f32 %v112_v33, %v81_v34 }
 0x155   :  { %v82_v38 = vmul.f32 %v111_v31, %v74_v36  ;;  %92 = vst.msk [vmem:[#allocation5] sm:$0xff] %vm31_vm0, %v90_v37 }
 0x157   :  { %v91_v39 = vadd.f32 %v112_v33, %v82_v38 }
 0x159   :  { %93 = vst.msk [vmem:[#allocation5 + $0x8] sm:$0xff] %vm31_vm0, %v91_v39 }
 0x15a   :  { %156 = shalt.err (!%p153_p9)
}
 0x15b   :  { %105 = dma.vmem_to_hbm [thread:$0]  %s100_s23, 256, %s220_s3, [#allocation4], %s170_s15, %s170_s15, %s171_s16  }
 0x15c   :  { %167 = dma.done.wait [#allocation4], 256  }
 0x15d   :  { %168 = vsyncadd [#allocation4], 4294967040 }
 0x15e   :  { %109 = vsyncpa [#allocation3], 1 }
 0x15f   :  { %110 = vsyncpa [#allocation4], 1 }

</bundles_post_ra>
